<compile_context>
chip_gen: v7x
topology: tpu7x:2x2x1
jax: 0.10.0
libtpu: 0.0.40
codegen_flags: <defaults>
</compile_context>

<pallas_src>
import functools
import math
import sys
from dataclasses import dataclass
from typing import NamedTuple

import jax
import jax.numpy as jnp
from jax.experimental import pallas as pl
from jax.experimental.pallas import tpu as pltpu


@dataclass
class Config:
    layer_size: int = 32


_SQRT_2_OVER_PI = 0.7978845608028654
_MIB = 1024 * 1024


def _round_up(x, m):
    return (x + m - 1) // m * m


def _cdiv(a, b):
    return (a + b - 1) // b


def _sublane_multiple(dtype) -> int:
    # Second-to-last block dim must be a multiple of 8 (f32) / 16 (bf16) / 32 (int8).
    return 8 * max(1, 4 // jnp.dtype(dtype).itemsize)


# ---------------------------------------------------------------------------
# Hardware queries (trace-time Python; guarded so interpret / unusual HW still work)
# ---------------------------------------------------------------------------
@functools.lru_cache(maxsize=None)
def _physical_vmem_bytes() -> int:
    try:
        info = pltpu.get_tpu_info()
        for name in ("vmem_capacity_bytes", "vmem_bytes", "vmem_size_bytes"):
            v = getattr(info, name, None)
            if v:
                return int(v)
    except Exception:
        pass
    return 128 * _MIB


@functools.lru_cache(maxsize=None)
def _tpu_generation() -> str:
    try:
        kind = jax.devices()[0].device_kind.lower()
    except Exception:
        return "unknown"
    if "v5 lite" in kind or "v5e" in kind or "v5lite" in kind:
        return "v5e"
    if "v7" in kind:
        return "v7x"
    if "v6" in kind:
        return "v6e"
    return "other"


def _vmem_cap_bytes() -> int:
    phys = _physical_vmem_bytes()
    if phys <= 64 * _MIB:                       # v7x-class: leave Mosaic scratch headroom
        return max(32 * _MIB, phys - 8 * _MIB)
    return min(phys - 24 * _MIB, 104 * _MIB)    # 128 MiB parts (v5e / v6e)


# ---------------------------------------------------------------------------
# One-time capability probe: is pl.Buffered(1) accepted for a constant-index operand?
# (Probe failure of any kind just means "use default double buffering"; the real
#  kernel builds below never use a silent fallback.)
# ---------------------------------------------------------------------------
def _probe_kernel(a_ref, c_ref, o_ref):
    o_ref[...] = a_ref[...] + c_ref[...]


@functools.lru_cache(maxsize=None)
def _single_buffer_weights_supported() -> bool:
    try:
        fn = pl.pallas_call(
            _probe_kernel,
            out_shape=jax.ShapeDtypeStruct((16, 128), jnp.float32),
            grid=(2,),
            in_specs=[
                pl.BlockSpec((8, 128), lambda i: (i, 0)),
                pl.BlockSpec((8, 128), lambda i: (0, 0),
                             pipeline_mode=pl.Buffered(1)),
            ],
            out_specs=pl.BlockSpec((8, 128), lambda i: (i, 0)),
        )
        jax.jit(fn).lower(
            jax.ShapeDtypeStruct((16, 128), jnp.float32),
            jax.ShapeDtypeStruct((8, 128), jnp.float32),
        ).compile()
        return True
    except Exception as e:  # capability probe only — logged, never silent
        print(f"[mlp_pallas] single-buffered resident weights unavailable "
              f"({type(e).__name__}); using double-buffered resident weights",
              file=sys.stderr)
        return False


# ---------------------------------------------------------------------------
# Kernels
# ---------------------------------------------------------------------------
def _mlp_kernel_resident(x_ref, w1_ref, b1_ref, w2_ref, b2_ref, o_ref):
    # x: (tm, Dp) activation tile; W1/W2/b1/b2 fully resident in VMEM.
    x = x_ref[...].astype(w1_ref.dtype)            # in-kernel downcast (no wrapper HBM pass)
    h = jnp.dot(x, w1_ref[...], preferred_element_type=jnp.float32) + b1_ref[...]
    # tanh-approximate GELU (matches nn.GELU(approximate='tanh')), computed in f32.
    g = 0.5 * h * (1.0 + jnp.tanh(_SQRT_2_OVER_PI * (h + 0.044715 * (h * h * h))))
    o = jnp.dot(g.astype(w2_ref.dtype), w2_ref[...],
                preferred_element_type=jnp.float32) + b2_ref[...]
    o_ref[...] = o.astype(o_ref.dtype)


def _mlp_kernel_htiled(x_ref, w1_ref, b1_ref, w2_ref, b2_ref, o_ref, acc_ref):
    # Streams (Dp, th)/(th, Dp) weight chunks along the "arbitrary" hidden axis and
    # accumulates the second matmul into an f32 VMEM scratch (bounded intermediates).
    hi = pl.program_id(1)

    @pl.when(hi == 0)
    def _():
        acc_ref[...] = jnp.zeros_like(acc_ref)

    x = x_ref[...].astype(w1_ref.dtype)
    h = jnp.dot(x, w1_ref[...], preferred_element_type=jnp.float32) + b1_ref[...]
    g = 0.5 * h * (1.0 + jnp.tanh(_SQRT_2_OVER_PI * (h + 0.044715 * (h * h * h))))
    acc_ref[...] += jnp.dot(g.astype(w2_ref.dtype), w2_ref[...],
                            preferred_element_type=jnp.float32)

    @pl.when(hi == pl.num_programs(1) - 1)
    def _():
        o_ref[...] = (acc_ref[...] + b2_ref[...]).astype(o_ref.dtype)


# ---------------------------------------------------------------------------
# Parameter preparation (pad + cast ONCE; reuse across forward calls)
# ---------------------------------------------------------------------------
class MLPParams(NamedTuple):
    w1: jax.Array   # (Dp, Hp)  matmul dtype, zero-padded
    b1: jax.Array   # (1, Hp)   float32
    w2: jax.Array   # (Hp, Dp)  matmul dtype, zero-padded
    b2: jax.Array   # (1, Dp)   float32


def prepare_mlp_params(w1, b1, w2, b2, *, matmul_dtype=jnp.bfloat16) -> MLPParams:
    """Pad feature dims to multiples of 128 and cast weights once."""
    D, H = w1.shape
    assert w2.shape == (H, D) and b1.shape == (H,) and b2.shape == (D,)
    mm = jnp.dtype(matmul_dtype) if matmul_dtype is not None else jnp.dtype(w1.dtype)
    Dp, Hp = _round_up(D, 128), _round_up(H, 128)
    w1p = jnp.pad(w1.astype(mm), ((0, Dp - D), (0, Hp - H)))
    w2p = jnp.pad(w2.astype(mm), ((0, Hp - H), (0, Dp - D)))
    b1p = jnp.pad(b1.astype(jnp.float32), (0, Hp - H)).reshape(1, Hp)
    b2p = jnp.pad(b2.astype(jnp.float32), (0, Dp - D)).reshape(1, Dp)
    _single_buffer_weights_supported()   # warm the capability cache eagerly (logged once)
    return MLPParams(w1p, b1p, w2p, b2p)


# ---------------------------------------------------------------------------
# Builders + VMEM planning
# ---------------------------------------------------------------------------
def _build_resident(tm, Mp, Dp, Hp, out_dtype, cost, vmem_limit, single_buffer):
    res = dict(pipeline_mode=pl.Buffered(1)) if single_buffer else {}
    return pl.pallas_call(
        _mlp_kernel_resident,
        out_shape=jax.ShapeDtypeStruct((Mp, Dp), out_dtype),
        grid_spec=pltpu.PrefetchScalarGridSpec(
            num_scalar_prefetch=0,
            grid=(Mp // tm,),
            in_specs=[
                pl.BlockSpec((tm, Dp), lambda i: (i, 0)),          # x row tile (pipelined)
                pl.BlockSpec((Dp, Hp), lambda i: (0, 0), **res),   # W1 (resident)
                pl.BlockSpec((1, Hp), lambda i: (0, 0)),           # b1
                pl.BlockSpec((Hp, Dp), lambda i: (0, 0), **res),   # W2 (resident)
                pl.BlockSpec((1, Dp), lambda i: (0, 0)),           # b2
            ],
            out_specs=pl.BlockSpec((tm, Dp), lambda i: (i, 0)),
        ),
        compiler_params=pltpu.CompilerParams(
            dimension_semantics=("parallel",),      # shard row tiles across TCs (v7x)
            vmem_limit_bytes=vmem_limit,
        ),
        cost_estimate=cost,
    )


def _build_htiled(tm, th, Mp, Dp, Hp, out_dtype, cost, vmem_limit):
    return pl.pallas_call(
        _mlp_kernel_htiled,
        out_shape=jax.ShapeDtypeStruct((Mp, Dp), out_dtype),
        grid_spec=pltpu.PrefetchScalarGridSpec(
            num_scalar_prefetch=0,
            grid=(Mp // tm, Hp // th),
            in_specs=[
                pl.BlockSpec((tm, Dp), lambda i, h: (i, 0)),   # x tile, reused across h
                pl.BlockSpec((Dp, th), lambda i, h: (0, h)),   # W1 chunk (streamed)
                pl.BlockSpec((1, th), lambda i, h: (0, h)),    # b1 chunk
                pl.BlockSpec((th, Dp), lambda i, h: (h, 0)),   # W2 chunk (streamed)
                pl.BlockSpec((1, Dp), lambda i, h: (0, 0)),    # b2 (resident)
            ],
            out_specs=pl.BlockSpec((tm, Dp), lambda i, h: (i, 0)),
            scratch_shapes=[pltpu.VMEM((tm, Dp), jnp.float32)],
        ),
        compiler_params=pltpu.CompilerParams(
            dimension_semantics=("parallel", "arbitrary"),
            vmem_limit_bytes=vmem_limit,
        ),
        cost_estimate=cost,
    )


def _resident_vmem(tm, Dp, Hp, w_itm, x_itm, out_itm, wbuf):
    weights = wbuf * 2 * Dp * Hp * w_itm + 2 * (Hp + Dp) * 4
    act = 2 * tm * Dp * (x_itm + out_itm)            # double-buffered x + out tiles
    inter = tm * Hp * (4 + 4 + w_itm)                # h (f32) + gelu (f32) + gelu cast
    return weights + act + inter


def _htiled_vmem(tm, th, Dp, Hp, w_itm, x_itm, out_itm):
    weights = 2 * 2 * Dp * th * w_itm + 2 * th * 4 + 2 * Dp * 4
    act = 2 * tm * Dp * (x_itm + out_itm) + tm * Dp * 4   # + f32 accumulator scratch
    inter = tm * th * (4 + 4 + w_itm)
    return weights + act + inter


def _pick_hidden_block(Hp):
    for th in (2048, 1536, 1024, 768, 512, 384, 256, 128):
        if Hp % th == 0:
            return th
    return 128  # Hp is always a multiple of 128


# ---------------------------------------------------------------------------
# Forward
# ---------------------------------------------------------------------------
def mlp_forward(x, params: MLPParams, *, tm=None, out_dtype=None, plan=None):
    """GPT-2 MLP forward.  x: (..., D); params from prepare_mlp_params."""
    *lead, D = x.shape
    M = int(math.prod(lead)) if lead else 1
    Dp, Hp = params.w1.shape
    assert Dp == _round_up(D, 128), "params were prepared for a different d_model"

    out_dtype = jnp.dtype(out_dtype) if out_dtype is not None else jnp.dtype(x.dtype)
    w_itm = jnp.dtype(params.w1.dtype).itemsize
    x_itm = jnp.dtype(x.dtype).itemsize
    out_itm = out_dtype.itemsize

    gen = _tpu_generation()
    cap = _vmem_cap_bytes()
    row_align = max(_sublane_multiple(x.dtype), _sublane_multiple(out_dtype))

    # Row-tile upper bound: never pad M beyond one tile; on v7x keep >= 2 (>= 4 when
    # M is large) row tiles so both TensorCores get work under the "parallel" M axis.
    tm_cap = _round_up(M, row_align)
    if gen == "v7x":
        min_tiles = 4 if M >= 4 * 256 else 2
        if M >= min_tiles * row_align:
            tm_cap = min(tm_cap, _round_up(_cdiv(M, min_tiles), row_align))

    if tm is None:
        tm = 256 if gen == "v5e" else (1024 if M >= 8192 else 512)
    base = max(row_align, min(_round_up(tm, row_align), tm_cap))

    candidates = []
    for t in (base, 512, 256, 128, 64, row_align):
        t = max(row_align, min(_round_up(t, row_align), tm_cap))
        if t not in candidates:
            candidates.append(t)
    candidates.sort(reverse=True)

    use_sb = _single_buffer_weights_supported()
    th = _pick_hidden_block(Hp)

    allow_resident = plan in (None, "auto", "resident")
    allow_htiled = plan in (None, "auto", "htiled")
    chosen = None
    if allow_resident:
        wbuf = 1 if use_sb else 2
        for t in candidates:
            if _resident_vmem(t, Dp, Hp, w_itm, x_itm, out_itm, wbuf) <= cap:
                chosen = ("resident", t)
                break
        if chosen is None and not allow_htiled:
            chosen = ("resident", candidates[-1])
    if chosen is None and allow_htiled:
        for t in candidates:
            if _htiled_vmem(t, th, Dp, Hp, w_itm, x_itm, out_itm) <= cap:
                chosen = ("htiled", t)
                break
        if chosen is None:
            chosen = ("htiled", candidates[-1])
    kind, tm = chosen

    grid_m = _cdiv(M, tm)
    Mp = grid_m * tm

    x2d = x.reshape(M, D)
    if (Mp, Dp) != (M, D):     # skip the pad entirely at real GPT-2 sizes
        x2d = jnp.pad(x2d, ((0, Mp - M), (0, Dp - D)))

    if kind == "resident":
        needed = _resident_vmem(tm, Dp, Hp, w_itm, x_itm, out_itm, 1 if use_sb else 2)
        weight_reads = 1
    else:
        needed = _htiled_vmem(tm, th, Dp, Hp, w_itm, x_itm, out_itm)
        weight_reads = grid_m
    vmem_limit = int(min(cap, max(32 * _MIB, int(1.3 * needed) + 2 * _MIB)))

    cost = pl.CostEstimate(
        flops=4 * Mp * Dp * Hp,
        transcendentals=Mp * Hp,
        bytes_accessed=(Mp * Dp * x_itm + Mp * Dp * out_itm
                        + weight_reads * 2 * Dp * Hp * w_itm + (Hp + Dp) * 4),
    )

    if kind == "resident":
        call = _build_resident(tm, Mp, Dp, Hp, out_dtype, cost, vmem_limit, use_sb)
    else:
        call = _build_htiled(tm, th, Mp, Dp, Hp, out_dtype, cost, vmem_limit)

    out2d = call(x2d, params.w1, params.b1, params.w2, params.b2)
    if (Mp, Dp) != (M, D):
        out2d = out2d[:M, :D]
    return out2d.reshape(*lead, D)


# ---------------------------------------------------------------------------
# Demo / self-test
# ---------------------------------------------------------------------------
def _torch_linear_init(key, out_features, in_features, dtype=jnp.float32):
    # Deterministic init mirroring nn.Linear default: U(-1/sqrt(fan_in), 1/sqrt(fan_in)).
    kw, kb = jax.random.split(key)
    bound = 1.0 / math.sqrt(in_features)
    w = jax.random.uniform(kw, (out_features, in_features), dtype,
                           minval=-bound, maxval=bound)
    b = jax.random.uniform(kb, (out_features,), dtype, minval=-bound, maxval=bound)
    return w, b


if __name__ == "__main__":
    cfg = Config(layer_size=32)
    D = cfg.layer_size
    H = 4 * D
    B, T = 2, 8   # toy shapes; the kernel only pays off at real GPT-2 sizes (D >= 768)

    key = jax.random.PRNGKey(0)
    kx, k1, k2 = jax.random.split(key, 3)

    # PyTorch Linear stores weight as (out, in); the kernel consumes the transpose.
    w1_pt, b1 = _torch_linear_init(k1, H, D)   # linear1: D -> 4D
    w2_pt, b2 = _torch_linear_init(k2, D, H)   # linear2: 4D -> D
    w1, w2 = w1_pt.T, w2_pt.T                  # (D, 4D), (4D, D)

    x = jax.random.normal(kx, (B, T, D), dtype=jnp.float32)

    # Pad + cast weights ONCE, then jit the whole forward so the residual
    # pad / slice / reshape fuse with the kernel launch.
    params = prepare_mlp_params(w1, b1, w2, b2)

    fwd = jax.jit(mlp_forward)                                  # auto plan (resident here)
    out = jax.block_until_ready(fwd(x, params))

    # Also exercise the streamed-weight (H-tiled) path used for XL-class shapes.
    fwd_ht = jax.jit(functools.partial(mlp_forward, plan="htiled"))
    out_ht = jax.block_until_ready(fwd_ht(x, params))

    # Plain-JAX f32 reference (same tanh-GELU). Kernel uses bf16 MXU operands with
    # f32 accumulation, so compare at bf16-level tolerance.
    h_ref = x @ w1 + b1
    g_ref = 0.5 * h_ref * (1.0 + jnp.tanh(_SQRT_2_OVER_PI * (h_ref + 0.044715 * h_ref ** 3)))
    ref = g_ref @ w2 + b2

    assert out.shape == ref.shape
    assert jnp.allclose(out, ref, atol=2e-2, rtol=2e-2), "resident path mismatch vs reference"
    assert jnp.allclose(out_ht, ref, atol=2e-2, rtol=2e-2), "h-tiled path mismatch vs reference"
    print("KERNEL_OK")
</pallas_src>

<mosaic_0001>
module attributes {stable_mosaic.version = 11 : i64} {
  func.func @_mlp_kernel_resident(%arg0: i32, %arg1: memref<16x128xf32, #tpu.memory_space<vmem>>, %arg2: memref<128x128xbf16, #tpu.memory_space<vmem>>, %arg3: memref<1x128xf32, #tpu.memory_space<vmem>>, %arg4: memref<128x128xbf16, #tpu.memory_space<vmem>>, %arg5: memref<1x128xf32, #tpu.memory_space<vmem>>, %arg6: memref<16x128xf32, #tpu.memory_space<vmem>>) attributes {dimension_semantics = [#tpu.dimension_semantics<parallel>], iteration_bounds = array<i64: 1>, scalar_prefetch = 0 : i64, scratch_operands = 0 : i64, tpu.core_type = #tpu.core_type<tc>, window_params = [{transform_indices = @transform_0, window_bounds = array<i64: 16, 128>}, {pipeline_mode = #tpu.pipeline_mode<synchronous>, transform_indices = @transform_1, window_bounds = array<i64: 128, 128>}, {pipeline_mode = #tpu.pipeline_mode<synchronous>, transform_indices = @transform_2, window_bounds = array<i64: 1, 128>}, {pipeline_mode = #tpu.pipeline_mode<synchronous>, transform_indices = @transform_3, window_bounds = array<i64: 128, 128>}, {pipeline_mode = #tpu.pipeline_mode<synchronous>, transform_indices = @transform_4, window_bounds = array<i64: 1, 128>}, {transform_indices = @transform_5, window_bounds = array<i64: 16, 128>}]} {
    %c0 = arith.constant 0 : index
    %c0_0 = arith.constant 0 : index
    %0 = vector.load %arg1[%c0, %c0_0] : memref<16x128xf32, #tpu.memory_space<vmem>>, vector<16x128xf32>
    %1 = arith.truncf %0 : vector<16x128xf32> to vector<16x128xbf16>
    %c0_1 = arith.constant 0 : index
    %c0_2 = arith.constant 0 : index
    %2 = vector.load %arg2[%c0_1, %c0_2] : memref<128x128xbf16, #tpu.memory_space<vmem>>, vector<128x128xbf16>
    %cst = arith.constant dense<0.000000e+00> : vector<16x128xf32>
    %3 = tpu.matmul %1, %2, %cst {dimension_numbers = #tpu.dot_dimension_numbers<[1], [0], [0], [1], [0, 0, 1, 1], [], []>} : vector<16x128xbf16>, vector<128x128xbf16>, vector<16x128xf32> -> vector<16x128xf32>
    %c0_3 = arith.constant 0 : index
    %c0_4 = arith.constant 0 : index
    %4 = vector.load %arg3[%c0_3, %c0_4] : memref<1x128xf32, #tpu.memory_space<vmem>>, vector<1x128xf32>
    %5 = vector.broadcast %4 : vector<1x128xf32> to vector<16x128xf32>
    %6 = arith.addf %3, %5 : vector<16x128xf32>
    %cst_5 = arith.constant 5.000000e-01 : f32
    %7 = vector.broadcast %cst_5 : f32 to vector<16x128xf32>
    %8 = arith.mulf %7, %6 : vector<16x128xf32>
    %9 = arith.mulf %6, %6 : vector<16x128xf32>
    %10 = arith.mulf %9, %6 : vector<16x128xf32>
    %cst_6 = arith.constant 4.471500e-02 : f32
    %11 = vector.broadcast %cst_6 : f32 to vector<16x128xf32>
    %12 = arith.mulf %11, %10 : vector<16x128xf32>
    %13 = arith.addf %6, %12 : vector<16x128xf32>
    %cst_7 = arith.constant 0.797884583 : f32
    %14 = vector.broadcast %cst_7 : f32 to vector<16x128xf32>
    %15 = arith.mulf %14, %13 : vector<16x128xf32>
    %16 = math.tanh %15 : vector<16x128xf32>
    %cst_8 = arith.constant 1.000000e+00 : f32
    %17 = vector.broadcast %cst_8 : f32 to vector<16x128xf32>
    %18 = arith.addf %17, %16 : vector<16x128xf32>
    %19 = arith.mulf %8, %18 : vector<16x128xf32>
    %20 = arith.truncf %19 : vector<16x128xf32> to vector<16x128xbf16>
    %c0_9 = arith.constant 0 : index
    %c0_10 = arith.constant 0 : index
    %21 = vector.load %arg4[%c0_9, %c0_10] : memref<128x128xbf16, #tpu.memory_space<vmem>>, vector<128x128xbf16>
    %cst_11 = arith.constant dense<0.000000e+00> : vector<16x128xf32>
    %22 = tpu.matmul %20, %21, %cst_11 {dimension_numbers = #tpu.dot_dimension_numbers<[1], [0], [0], [1], [0, 0, 1, 1], [], []>} : vector<16x128xbf16>, vector<128x128xbf16>, vector<16x128xf32> -> vector<16x128xf32>
    %c0_12 = arith.constant 0 : index
    %c0_13 = arith.constant 0 : index
    %23 = vector.load %arg5[%c0_12, %c0_13] : memref<1x128xf32, #tpu.memory_space<vmem>>, vector<1x128xf32>
    %24 = vector.broadcast %23 : vector<1x128xf32> to vector<16x128xf32>
    %25 = arith.addf %22, %24 : vector<16x128xf32>
    %c0_14 = arith.constant 0 : index
    %c0_15 = arith.constant 0 : index
    %26 = vector.load %arg6[%c0_14, %c0_15] : memref<16x128xf32, #tpu.memory_space<vmem>>, vector<16x128xf32>
    tpu.vector_store %arg6[%c0_14, %c0_15], %25 {strides = array<i32>} : memref<16x128xf32, #tpu.memory_space<vmem>>, vector<16x128xf32>,
    return
  }
  func.func @transform_0(%arg0: i32) -> (i32, i32) {
    %c0_i32 = arith.constant 0 : i32
    %c0_i32_0 = arith.constant 0 : i32
    return %arg0, %c0_i32 : i32, i32
  }
  func.func @transform_1(%arg0: i32) -> (i32, i32) {
    %c0_i32 = arith.constant 0 : i32
    %c0_i32_0 = arith.constant 0 : i32
    %c0_i32_1 = arith.constant 0 : i32
    return %c0_i32, %c0_i32_0 : i32, i32
  }
  func.func @transform_2(%arg0: i32) -> (i32, i32) {
    %c0_i32 = arith.constant 0 : i32
    %c0_i32_0 = arith.constant 0 : i32
    %c0_i32_1 = arith.constant 0 : i32
    return %c0_i32, %c0_i32_0 : i32, i32
  }
  func.func @transform_3(%arg0: i32) -> (i32, i32) {
    %c0_i32 = arith.constant 0 : i32
    %c0_i32_0 = arith.constant 0 : i32
    %c0_i32_1 = arith.constant 0 : i32
    return %c0_i32, %c0_i32_0 : i32, i32
  }
  func.func @transform_4(%arg0: i32) -> (i32, i32) {
    %c0_i32 = arith.constant 0 : i32
    %c0_i32_0 = arith.constant 0 : i32
    %c0_i32_1 = arith.constant 0 : i32
    return %c0_i32, %c0_i32_0 : i32, i32
  }
  func.func @transform_5(%arg0: i32) -> (i32, i32) {
    %c0_i32 = arith.constant 0 : i32
    %c0_i32_0 = arith.constant 0 : i32
    return %arg0, %c0_i32 : i32, i32
  }
}

</mosaic_0001>

<bundles_post_ra>
// kernel: mlp_forward.1
= control target key start
LH: loop header
LB: loop body
LE: loop exit
PB: predicated region body
PF: predicated region fallthrough
CT: control target
= control target key end

     0   :  { %10 = vsyncpa [#allocation3], 0  ;;  %s531_s0 = inlined_call_operand.vmem [shape: f32[16,128], index: 0, kind: input, shape index: {}]   ;;  %s532_s1 = inlined_call_operand.hbm [shape: bf16[128,128], index: 1, kind: input, shape index: {}]   ;;  %s533_s2 = inlined_call_operand.vmem [shape: f32[1,128], index: 2, kind: input, shape index: {}]   ;;  %s534_s3 = inlined_call_operand.hbm [shape: bf16[128,128], index: 3, kind: input, shape index: {}]   ;;  %s535_s4 = inlined_call_operand.vmem [shape: f32[1,128], index: 4, kind: input, shape index: {}]   ;;  %s536_s5 = inlined_call_operand.vmem [shape: f32[16,128], index: 5, kind: output, shape index: {}]  }
   0x1   :  { %11 = vsyncpa [#allocation5], 0  ;;  %s453_s18 = smov [#allocation2]   ;;  %s405_s22 = scalar_lea.hbm %s532_s1, 1024 }
   0x2   :  { %s19_s19 = sshll.u32 %s453_s18, 4  ;;  %p406_p0 = scmp.ne.s32.totalorder %s532_s1, %s405_s22  ;;  %s20_s19 = int_to_ptr.vmem [resolvable:$true] %s19_s19 }
   0x3   :  { %p409_p1 = scmp.lt.u32.totalorder %s405_s22, %s532_s1 }
   0x5   :  { %p411_p2 = pnand %p409_p1, %p406_p0 }
   0x7   :  { %414 = shalt.err (!%p411_p2)
}
   0x8   :  { %s415_s27 = scalar_lea.vmem %s20_s19, 1024  ;;  %p420_p4 = scmp.lt.s32.totalorder %s20_s19, %s20_s19 }
   0x9   :  { %p416_p3 = scmp.ne.s32.totalorder %s20_s19, %s415_s27  ;;  %p421_p5 = scmp.lt.s32.totalorder %s415_s27, %s415_s27 }
   0xb   :  { %p422_p6 = por %p421_p5, %p420_p4 }
   0xd   :  { %p423_p7 = pnand %p422_p6, %p416_p3 }
   0xf   :  { %426 = shalt.err (!%p423_p7)
}
  0x10   :  { %s454_s28 = smov 64   ;;  %s455_s29 = smov 4  }
  0x11   :  { %25 = dma.hbm_to_vmem [thread:$0]  %s532_s1, 1024, %s20_s19, [#allocation3], %s454_s28, %s454_s28, %s455_s29  }
  0x12   :  { %s456_s7 = smov [#allocation4]   ;;  %s427_s11 = scalar_lea.hbm %s534_s3, 1024 }
  0x13   :  { %s33_s8 = sshll.u32 %s456_s7, 4  ;;  %p428_p8 = scmp.ne.s32.totalorder %s534_s3, %s427_s11  ;;  %s34_s8 = int_to_ptr.vmem [resolvable:$true] %s33_s8 }
  0x14   :  { %p431_p9 = scmp.lt.u32.totalorder %s427_s11, %s534_s3 }
  0x16   :  { %p433_p10 = pnand %p431_p9, %p428_p8 }
  0x18   :  { %436 = shalt.err (!%p433_p10)
}
  0x19   :  { %s437_s16 = scalar_lea.vmem %s34_s8, 1024  ;;  %p442_p12 = scmp.lt.s32.totalorder %s34_s8, %s34_s8 }
  0x1a   :  { %p438_p11 = scmp.ne.s32.totalorder %s34_s8, %s437_s16  ;;  %p443_p13 = scmp.lt.s32.totalorder %s437_s16, %s437_s16 }
  0x1c   :  { %p444_p0 = por %p443_p13, %p442_p12 }
  0x1e   :  { %p445_p1 = pnand %p444_p0, %p438_p11 }
  0x20   :  { %448 = shalt.err (!%p445_p1)
}
  0x21   :  { %39 = dma.hbm_to_vmem [thread:$0]  %s534_s3, 1024, %s34_s8, [#allocation5], %s454_s28, %s454_s28, %s455_s29  }
  0x22   :  { %449 = dma.done.wait [#allocation3], 1024  }
  0x23   :  { %450 = vsyncadd [#allocation3], 4294966272 }
  0x24   :  { %451 = dma.done.wait [#allocation5], 1024  }
  0x25   :  { %452 = vsyncadd [#allocation5], 4294966272  ;;  %v457_v0 = vmov 0.0   ;;  %vm458_vm0 = vmmov 0   ;;  %v385_v1 = vld [vmem:[#allocation2] sm:$0xff]   ;;  %v386_v2 = vld [vmem:[#allocation2 + $0x8] sm:$0xff]  }
  0x26   :  { %339 = vmatprep.subr.bf16.mxu0 %v457_v0  ;;  %355 = vmatprep.mubr.msk.bf16.mxu0 %vm458_vm0, %v457_v0  ;;  %v387_v3 = vld [vmem:[#allocation2 + $0x10] sm:$0xff]   ;;  %v388_v4 = vld [vmem:[#allocation2 + $0x18] sm:$0xff]   ;;  %v389_v5 = vld [vmem:[#allocation2 + $0x20] sm:$0xff]  }
  0x27   :  { %359 = vmatprep.subr.bf16.mxu1 %v457_v0  ;;  %375 = vmatprep.mubr.msk.bf16.mxu1 %vm458_vm0, %v457_v0  ;;  %v390_v6 = vld [vmem:[#allocation2 + $0x28] sm:$0xff]   ;;  %v391_v7 = vld [vmem:[#allocation2 + $0x30] sm:$0xff]   ;;  %v392_v8 = vld [vmem:[#allocation2 + $0x38] sm:$0xff]  }
  0x28   :  { %340 = vmatpush3.bf16.msra.mxu0 %v385_v1  ;;  %v49_v9 = vld [vmem:[%s531_s0] sm:$0xff]  ;;  %v50_v10 = vld [vmem:[%s531_s0 + $0x8] sm:$0xff]  ;;  %v395_v14 = vld [vmem:[#allocation4 + $0x10] sm:$0xff]  }
  0x29   :  { %341 = vmatprep.subr.bf16.mxu0 %v457_v0  ;;  %v51_v11 = vpack.c.bf16 %v50_v10, %v49_v9  ;;  %v393_v12 = vld [vmem:[#allocation4] sm:$0xff]   ;;  %v394_v13 = vld [vmem:[#allocation4 + $0x8] sm:$0xff]   ;;  %v396_v15 = vld [vmem:[#allocation4 + $0x18] sm:$0xff]  }
  0x2a   :  { %360 = vmatpush3.bf16.msra.mxu1 %v393_v12  ;;  %v397_v16 = vld [vmem:[#allocation4 + $0x20] sm:$0xff]   ;;  %v398_v17 = vld [vmem:[#allocation4 + $0x28] sm:$0xff]   ;;  %v399_v18 = vld [vmem:[#allocation4 + $0x30] sm:$0xff]  }
  0x2b   :  { %361 = vmatprep.subr.bf16.mxu1 %v457_v0  ;;  %v400_v19 = vld [vmem:[#allocation4 + $0x38] sm:$0xff]   ;;  %v303_v20 = vld [vmem:[%s533_s2] ss:$0 sm:$0xff] }
  0x2c   :  { %342 = vmatpush3.bf16.msra.mxu0 %v386_v2  ;;  %v312_v46 = vld [vmem:[%s535_s4] ss:$0 sm:$0xff] }
  0x2d   :  { %343 = vmatprep.subr.bf16.mxu0 %v457_v0 }
  0x2e   :  { %362 = vmatpush3.bf16.msra.mxu1 %v394_v13 }
  0x2f   :  { %363 = vmatprep.subr.bf16.mxu1 %v457_v0 }
  0x30   :  { %344 = vmatpush3.bf16.msra.mxu0 %v387_v3 }
  0x31   :  { %345 = vmatprep.subr.bf16.mxu0 %v457_v0 }
  0x32   :  { %364 = vmatpush3.bf16.msra.mxu1 %v395_v14 }
  0x33   :  { %365 = vmatprep.subr.bf16.mxu1 %v457_v0 }
  0x34   :  { %346 = vmatpush3.bf16.msra.mxu0 %v388_v4 }
  0x35   :  { %347 = vmatprep.subr.bf16.mxu0 %v457_v0 }
  0x36   :  { %366 = vmatpush3.bf16.msra.mxu1 %v396_v15 }
  0x37   :  { %367 = vmatprep.subr.bf16.mxu1 %v457_v0 }
  0x38   :  { %348 = vmatpush3.bf16.msra.mxu0 %v389_v5 }
  0x39   :  { %349 = vmatprep.subr.bf16.mxu0 %v457_v0 }
  0x3a   :  { %368 = vmatpush3.bf16.msra.mxu1 %v397_v16 }
  0x3b   :  { %369 = vmatprep.subr.bf16.mxu1 %v457_v0 }
  0x3c   :  { %350 = vmatpush3.bf16.msra.mxu0 %v390_v6 }
  0x3d   :  { %351 = vmatprep.subr.bf16.mxu0 %v457_v0 }
  0x3e   :  { %370 = vmatpush3.bf16.msra.mxu1 %v398_v17 }
  0x3f   :  { %371 = vmatprep.subr.bf16.mxu1 %v457_v0 }
  0x40   :  { %352 = vmatpush3.bf16.msra.mxu0 %v391_v7 }
  0x41   :  { %353 = vmatprep.subr.bf16.mxu0 %v457_v0 }
  0x42   :  { %372 = vmatpush3.bf16.msra.mxu1 %v399_v18 }
  0x43   :  { %373 = vmatprep.subr.bf16.mxu1 %v457_v0 }
  0x44   :  { %354 = vmatpush3.bf16.msra.mxu0 %v392_v8 }
  0x46   :  { %374 = vmatpush3.bf16.msra.mxu1 %v400_v19 }
  0x47   :  { %356 = vmatmul.mubr.bf16.vlgmr.msra.gmra.mrb[0].mxu0 %v51_v11 }
 0x11a   :  { %v157_v21 = vpop.f32.mrb[0].mxu0 }
 0x11b   :  { %v158_v22 = vadd.f32 %v303_v20, %v157_v21  ;;  %v357_v23 = vpop.f32.mrb[1].mxu0 }
 0x11c   :  { %v160_v24 = vpop.f32.mrb[2].mxu0 }
 0x11d   :  { %v166_v25 = vmul.f32 %v158_v22, %v158_v22  ;;  %v161_v26 = vadd.f32 %v303_v20, %v160_v24  ;;  %v358_v27 = vpop.f32.mrb[3].mxu0  ;;  %v164_v40 = vmul.f32 0.5, %v158_v22 }
 0x11f   :  { %v168_v28 = vmul.f32 %v166_v25, %v158_v22  ;;  %v167_v29 = vmul.f32 %v161_v26, %v161_v26  ;;  %v165_v41 = vmul.f32 0.5, %v161_v26 }
 0x121   :  { %v170_v30 = vmul.f32 0.044715, %v168_v28  ;;  %v169_v31 = vmul.f32 %v167_v29, %v161_v26 }
 0x123   :  { %v172_v32 = vadd.f32 %v170_v30, %v158_v22  ;;  %v171_v33 = vmul.f32 0.044715, %v169_v31 }
 0x125   :  { %v174_v34 = vmul.f32 0.7978846, %v172_v32  ;;  %v173_v35 = vadd.f32 %v171_v33, %v161_v26 }
 0x127   :  { %401 = vtanh.f32 %v174_v34  ;;  %v175_v36 = vmul.f32 0.7978846, %v173_v35 }
 0x129   :  { %403 = vtanh.f32 %v175_v36 }
 0x131   :  { %v402_v37 = vpop.eup %401 }
 0x132   :  { %v178_v38 = vadd.f32 1.0, %v402_v37 }
 0x133   :  { %v404_v39 = vpop.eup %403 }
 0x134   :  { %v179_v42 = vadd.f32 1.0, %v404_v39  ;;  %v180_v43 = vmul.f32 %v178_v38, %v164_v40 }
 0x136   :  { %v181_v44 = vmul.f32 %v179_v42, %v165_v41 }
 0x138   :  { %v182_v45 = vpack.c.bf16 %v181_v44, %v180_v43 }
 0x13a   :  { %376 = vmatmul.mubr.bf16.vlgmr.msra.gmra.mrb[0].mxu1 %v182_v45 }
 0x20d   :  { %v288_v47 = vpop.f32.mrb[0].mxu1 }
 0x20e   :  { %v289_v48 = vadd.f32 %v312_v46, %v288_v47  ;;  %v377_v49 = vpop.f32.mrb[1].mxu1 }
 0x20f   :  { %v291_v50 = vpop.f32.mrb[2].mxu1 }
 0x210   :  { %295 = vst [vmem:[%s536_s5] sm:$0xff] %v289_v48  ;;  %v292_v51 = vadd.f32 %v312_v46, %v291_v50  ;;  %v378_v52 = vpop.f32.mrb[3].mxu1 }
 0x212   :  { %296 = vst [vmem:[%s536_s5 + $0x8] sm:$0xff] %v292_v51 }
 0x213   :  { %301 = vsyncpa [#allocation3], 1 }
 0x214   :  { %302 = vsyncpa [#allocation5], 1 }

</bundles_post_ra>
